<compile_context>
chip_gen: v7x
topology: tpu7x:2x2x1
jax: 0.10.0
libtpu: 0.0.40
codegen_flags: <defaults>
</compile_context>

<pallas_src>
import jax
import jax.numpy as jnp
from jax import lax
from jax.experimental import pallas as pl
from jax.experimental.pallas import tpu as pltpu

# Contract dim 0 of the LHS (the seq_len axis) with dim 0 of the weight:
# (L, V) x (L, Dt) -> (V, Dt), i.e. x^T @ W without materializing a transpose.
_TRANSPOSED_LHS_DNUMS = (((0,), (0,)), ((), ()))


def _embed_kernel(x_ref, w_ref, b_ref, out_ref):
    # x_ref: (Bt, L, N)  w_ref: (L, Dt)  b_ref: (1, Dt)  out_ref: (Bt, N, Dt)
    w = w_ref[...]
    bias = b_ref[...].astype(jnp.float32)
    for bi in range(x_ref.shape[0]):                      # static, small batch tile
        y = lax.dot_general(x_ref[bi], w, _TRANSPOSED_LHS_DNUMS,
                            preferred_element_type=jnp.float32)
        out_ref[bi] = (y + bias).astype(out_ref.dtype)    # full-slab aligned store


def _embed_kernel_with_mark(x_ref, xm_ref, w_ref, b_ref, out_ref):
    # x_ref: (Bt, L, N)  xm_ref: (Bt, L, Nm)  w_ref: (L, Dt)  b_ref: (1, Dt)
    # out_ref: (Bt, N + Nm, Dt)
    w = w_ref[...]
    bias = b_ref[...].astype(jnp.float32)
    for bi in range(x_ref.shape[0]):
        # Fuse the variate-axis concat in VMEM: one LHS, one matmul, one store.
        lhs = jnp.concatenate([x_ref[bi], xm_ref[bi]], axis=-1)   # (L, N + Nm)
        y = lax.dot_general(lhs, w, _TRANSPOSED_LHS_DNUMS,
                            preferred_element_type=jnp.float32)
        out_ref[bi] = (y + bias).astype(out_ref.dtype)


def _pick_d_tile(L, D, itemsize, budget_bytes):
    """Full-D block when the (double-buffered) weight fits (W stays resident);
    otherwise the largest multiple-of-128 tile dividing D that fits."""
    if D % 128 != 0 or 2 * L * D * itemsize <= budget_bytes:
        return D
    t = D
    while t > 128:
        if D % t == 0 and 2 * L * t * itemsize <= budget_bytes:
            return t
        t -= 128
    return 128


def _pick_batch_tile(B, per_batch_bytes, fixed_bytes, budget_bytes):
    """Largest divisor of B whose double-buffered blocks fit the VMEM budget."""
    for bt in range(B, 0, -1):
        if B % bt == 0 and fixed_bytes + bt * per_batch_bytes <= budget_bytes:
            return bt
    return 1


def prepare_params(weight, bias):
    """One-time parameter re-layout (hoist out of the per-call path):
    nn.Linear weight (d_model, L) -> (L, d_model) lane-dense, bias -> (1, d_model)."""
    return weight.T, bias.reshape(1, -1)


def data_embedding_inverted(x, w_t, bias2d, x_mark=None, *,
                            vmem_block_budget=16 * 1024 * 1024):
    """Forward pass of DataEmbedding_inverted (dropout = identity / eval mode).

    x:      (B, L, N)   input series (seq_len L == Linear in_features)
    x_mark: (B, L, Nm)  optional time-feature marks (or None)
    w_t:    (L, D)      pre-transposed nn.Linear weight (see prepare_params)
    bias2d: (1, D)      nn.Linear bias
    returns (B, N [+ Nm], D)
    """
    B, L, N = x.shape
    L_w, D = w_t.shape
    assert L_w == L, "weight in_features must equal seq_len"
    assert bias2d.shape == (1, D)

    itemsize = jnp.dtype(x.dtype).itemsize
    d_tile = _pick_d_tile(L, D, itemsize, vmem_block_budget)
    nd = D // d_tile

    if x_mark is None:
        Nm = 0
    else:
        Bm, Lm, Nm = x_mark.shape
        assert Bm == B and Lm == L
    n_tot = N + Nm

    fixed_bytes = 2 * (L * d_tile + d_tile) * itemsize               # W tile + bias
    per_batch_bytes = 2 * (L * N + L * Nm + n_tot * d_tile) * itemsize
    Bt = _pick_batch_tile(B, per_batch_bytes, fixed_bytes, vmem_block_budget)
    nb = B // Bt

    # d-tile axis OUTER so (if nd > 1) the weight block never changes inside the
    # batch sweep; with nd == 1 (the common case) W is fetched exactly once.
    grid = (nd, nb)

    if x_mark is None:
        kernel = _embed_kernel
        in_specs = [
            pl.BlockSpec((Bt, L, N), lambda j, b: (b, 0, 0)),        # x, native layout
            pl.BlockSpec((L, d_tile), lambda j, b: (0, j)),          # W^T tile
            pl.BlockSpec((1, d_tile), lambda j, b: (0, j)),          # bias tile
        ]
        args = (x, w_t, bias2d)
        in_bytes = x.size * itemsize
    else:
        kernel = _embed_kernel_with_mark
        in_specs = [
            pl.BlockSpec((Bt, L, N), lambda j, b: (b, 0, 0)),        # x
            pl.BlockSpec((Bt, L, Nm), lambda j, b: (b, 0, 0)),       # x_mark
            pl.BlockSpec((L, d_tile), lambda j, b: (0, j)),          # W^T tile
            pl.BlockSpec((1, d_tile), lambda j, b: (0, j)),          # bias tile
        ]
        args = (x, x_mark, w_t, bias2d)
        in_bytes = (x.size + x_mark.size) * itemsize

    out_bytes = B * n_tot * D * itemsize
    w_bytes = (L * D + D) * jnp.dtype(w_t.dtype).itemsize
    cost = pl.CostEstimate(flops=2 * B * n_tot * L * D,
                           transcendentals=0,
                           bytes_accessed=in_bytes + w_bytes + out_bytes)

    vmem_limit = int(min(64 * 1024 * 1024,
                         max(32 * 1024 * 1024,
                             2 * (fixed_bytes + Bt * per_batch_bytes))))

    out = pl.pallas_call(
        kernel,
        out_shape=jax.ShapeDtypeStruct((B, n_tot, D), x.dtype),
        grid=grid,
        in_specs=in_specs,
        out_specs=pl.BlockSpec((Bt, n_tot, d_tile), lambda j, b: (b, 0, j)),
        compiler_params=pltpu.CompilerParams(
            dimension_semantics=("parallel", "parallel"),
            vmem_limit_bytes=vmem_limit),
        cost_estimate=cost,
    )(*args)

    # TODO(synk): nn.Dropout(p=0.1) is the identity in eval/inference mode; training-mode
    # dropout (pltpu.prng_seed + pltpu.stateful_bernoulli) is not implemented here.
    return out


def _reference(x, weight, bias, x_mark=None):
    """Pure-JAX reference mirroring the PyTorch forward (eval mode)."""
    xt = jnp.transpose(x, (0, 2, 1))
    if x_mark is not None:
        xt = jnp.concatenate([xt, jnp.transpose(x_mark, (0, 2, 1))], axis=1)
    return xt @ weight.T + bias


if __name__ == "__main__":
    key = jax.random.PRNGKey(0)
    k1, k2, k3, k4 = jax.random.split(key, 4)

    # Small shapes implied by the forward: batch=2, seq_len(c_in)=16, variates=8,
    # time-mark features=4, d_model=32.
    B, L, N, Nm, D = 2, 16, 8, 4, 32

    # Round inputs to bf16-representable f32 so MXU matmul-precision modes do not
    # affect the comparison (products are exact; only f32 summation order differs).
    def _bf16_exact(a):
        return a.astype(jnp.bfloat16).astype(jnp.float32)

    x = _bf16_exact(jax.random.normal(k1, (B, L, N), dtype=jnp.float32))
    x_mark = _bf16_exact(jax.random.normal(k2, (B, L, Nm), dtype=jnp.float32))
    weight = _bf16_exact(jax.random.normal(k3, (D, L), dtype=jnp.float32) * 0.25)
    bias = _bf16_exact(jax.random.normal(k4, (D,), dtype=jnp.float32))

    # One-time parameter re-layout (cache this across forward calls).
    w_t, bias2d = prepare_params(weight, bias)

    out = data_embedding_inverted(x, w_t, bias2d, x_mark)       # with time marks
    out_none = data_embedding_inverted(x, w_t, bias2d, None)    # x_mark is None path
    out, out_none = jax.block_until_ready((out, out_none))

    ref = _reference(x, weight, bias, x_mark)
    ref_none = _reference(x, weight, bias, None)

    assert out.shape == (B, N + Nm, D)
    assert out_none.shape == (B, N, D)
    assert jnp.allclose(out, ref, atol=1e-4, rtol=1e-4)
    assert jnp.allclose(out_none, ref_none, atol=1e-4, rtol=1e-4)

    print("KERNEL_OK")
</pallas_src>

<mosaic_0001>
module attributes {stable_mosaic.version = 11 : i64} {
  func.func @_embed_kernel_with_mark(%arg0: i32, %arg1: i32, %arg2: memref<2x16x8xf32, #tpu.memory_space<vmem>>, %arg3: memref<2x16x4xf32, #tpu.memory_space<vmem>>, %arg4: memref<16x32xf32, #tpu.memory_space<vmem>>, %arg5: memref<1x32xf32, #tpu.memory_space<vmem>>, %arg6: memref<2x12x32xf32, #tpu.memory_space<vmem>>) attributes {dimension_semantics = [#tpu.dimension_semantics<parallel>, #tpu.dimension_semantics<parallel>], iteration_bounds = array<i64: 1, 1>, scalar_prefetch = 0 : i64, scratch_operands = 0 : i64, tpu.core_type = #tpu.core_type<tc>, window_params = [{transform_indices = @transform_0, window_bounds = array<i64: 2, 16, 8>}, {transform_indices = @transform_1, window_bounds = array<i64: 2, 16, 4>}, {transform_indices = @transform_2, window_bounds = array<i64: 16, 32>}, {transform_indices = @transform_3, window_bounds = array<i64: 1, 32>}, {transform_indices = @transform_4, window_bounds = array<i64: 2, 12, 32>}]} {
    %c0 = arith.constant 0 : index
    %c0_0 = arith.constant 0 : index
    %0 = vector.load %arg4[%c0, %c0_0] : memref<16x32xf32, #tpu.memory_space<vmem>>, vector<16x32xf32>
    %c0_1 = arith.constant 0 : index
    %c0_2 = arith.constant 0 : index
    %1 = vector.load %arg5[%c0_1, %c0_2] : memref<1x32xf32, #tpu.memory_space<vmem>>, vector<1x32xf32>
    %c0_3 = arith.constant 0 : index
    %c0_4 = arith.constant 0 : index
    %c0_5 = arith.constant 0 : index
    %2 = vector.load %arg2[%c0_3, %c0_4, %c0_5] : memref<2x16x8xf32, #tpu.memory_space<vmem>>, vector<1x16x8xf32>
    %3 = vector.shape_cast %2 : vector<1x16x8xf32> to vector<16x8xf32>
    %c0_6 = arith.constant 0 : index
    %c0_7 = arith.constant 0 : index
    %c0_8 = arith.constant 0 : index
    %4 = vector.load %arg3[%c0_6, %c0_7, %c0_8] : memref<2x16x4xf32, #tpu.memory_space<vmem>>, vector<1x16x4xf32>
    %5 = vector.shape_cast %4 : vector<1x16x4xf32> to vector<16x4xf32>
    %6 = tpu.concatenate %3, %5 in 1 : vector<16x8xf32>, vector<16x4xf32> -> vector<16x12xf32>
    %cst = arith.constant dense<0.000000e+00> : vector<12x32xf32>
    %7 = tpu.matmul %6, %0, %cst {dimension_numbers = #tpu.dot_dimension_numbers<[0], [0], [1], [1], [0, 1, 1, 1], [], []>} : vector<16x12xf32>, vector<16x32xf32>, vector<12x32xf32> -> vector<12x32xf32>
    %8 = vector.broadcast %1 : vector<1x32xf32> to vector<12x32xf32>
    %9 = arith.addf %7, %8 : vector<12x32xf32>
    %c0_9 = arith.constant 0 : index
    %c0_10 = arith.constant 0 : index
    %c0_11 = arith.constant 0 : index
    %10 = vector.load %arg6[%c0_9, %c0_10, %c0_11] : memref<2x12x32xf32, #tpu.memory_space<vmem>>, vector<1x12x32xf32>
    %11 = vector.shape_cast %10 : vector<1x12x32xf32> to vector<12x32xf32>
    %12 = vector.shape_cast %9 : vector<12x32xf32> to vector<1x12x32xf32>
    tpu.vector_store %arg6[%c0_9, %c0_10, %c0_11], %12 {strides = array<i32>} : memref<2x12x32xf32, #tpu.memory_space<vmem>>, vector<1x12x32xf32>,
    %c1 = arith.constant 1 : index
    %c0_12 = arith.constant 0 : index
    %c0_13 = arith.constant 0 : index
    %13 = vector.load %arg2[%c1, %c0_12, %c0_13] : memref<2x16x8xf32, #tpu.memory_space<vmem>>, vector<1x16x8xf32>
    %14 = vector.shape_cast %13 : vector<1x16x8xf32> to vector<16x8xf32>
    %c1_14 = arith.constant 1 : index
    %c0_15 = arith.constant 0 : index
    %c0_16 = arith.constant 0 : index
    %15 = vector.load %arg3[%c1_14, %c0_15, %c0_16] : memref<2x16x4xf32, #tpu.memory_space<vmem>>, vector<1x16x4xf32>
    %16 = vector.shape_cast %15 : vector<1x16x4xf32> to vector<16x4xf32>
    %17 = tpu.concatenate %14, %16 in 1 : vector<16x8xf32>, vector<16x4xf32> -> vector<16x12xf32>
    %cst_17 = arith.constant dense<0.000000e+00> : vector<12x32xf32>
    %18 = tpu.matmul %17, %0, %cst_17 {dimension_numbers = #tpu.dot_dimension_numbers<[0], [0], [1], [1], [0, 1, 1, 1], [], []>} : vector<16x12xf32>, vector<16x32xf32>, vector<12x32xf32> -> vector<12x32xf32>
    %19 = vector.broadcast %1 : vector<1x32xf32> to vector<12x32xf32>
    %20 = arith.addf %18, %19 : vector<12x32xf32>
    %c1_18 = arith.constant 1 : index
    %c0_19 = arith.constant 0 : index
    %c0_20 = arith.constant 0 : index
    %21 = vector.load %arg6[%c1_18, %c0_19, %c0_20] : memref<2x12x32xf32, #tpu.memory_space<vmem>>, vector<1x12x32xf32>
    %22 = vector.shape_cast %21 : vector<1x12x32xf32> to vector<12x32xf32>
    %23 = vector.shape_cast %20 : vector<12x32xf32> to vector<1x12x32xf32>
    tpu.vector_store %arg6[%c1_18, %c0_19, %c0_20], %23 {strides = array<i32>} : memref<2x12x32xf32, #tpu.memory_space<vmem>>, vector<1x12x32xf32>,
    return
  }
  func.func @transform_0(%arg0: i32, %arg1: i32) -> (i32, i32, i32) {
    %c0_i32 = arith.constant 0 : i32
    %c0_i32_0 = arith.constant 0 : i32
    %c0_i32_1 = arith.constant 0 : i32
    return %arg1, %c0_i32, %c0_i32_0 : i32, i32, i32
  }
  func.func @transform_1(%arg0: i32, %arg1: i32) -> (i32, i32, i32) {
    %c0_i32 = arith.constant 0 : i32
    %c0_i32_0 = arith.constant 0 : i32
    %c0_i32_1 = arith.constant 0 : i32
    return %arg1, %c0_i32, %c0_i32_0 : i32, i32, i32
  }
  func.func @transform_2(%arg0: i32, %arg1: i32) -> (i32, i32) {
    %c0_i32 = arith.constant 0 : i32
    %c0_i32_0 = arith.constant 0 : i32
    return %c0_i32, %arg0 : i32, i32
  }
  func.func @transform_3(%arg0: i32, %arg1: i32) -> (i32, i32) {
    %c0_i32 = arith.constant 0 : i32
    %c0_i32_0 = arith.constant 0 : i32
    return %c0_i32, %arg0 : i32, i32
  }
  func.func @transform_4(%arg0: i32, %arg1: i32) -> (i32, i32, i32) {
    %c0_i32 = arith.constant 0 : i32
    %c0_i32_0 = arith.constant 0 : i32
    return %arg1, %c0_i32, %arg0 : i32, i32, i32
  }
}

</mosaic_0001>

<bundles_post_ra>
// kernel: tpu_custom_call.1
= control target key start
LH: loop header
LB: loop body
LE: loop exit
PB: predicated region body
PF: predicated region fallthrough
CT: control target
= control target key end

     0   :  { %s338_s19 = smov 8   ;;  %vm32_vm0 = vcmask 64512   ;;  %vm73_vm1 = vcmask 130048   ;;  %vm157_vm2 = vcmask 257024   ;;  %vm155_vm3 = vcmask 261120   ;;  %s413_s1 = inlined_call_operand.vmem [shape: f32[2,16,4], index: 1, kind: input, shape index: {}]   ;;  %s414_s0 = inlined_call_operand.vmem [shape: f32[2,16,8], index: 0, kind: input, shape index: {}]   ;;  %s415_s2 = inlined_call_operand.vmem [shape: f32[16,32], index: 2, kind: input, shape index: {}]   ;;  %s416_s3 = inlined_call_operand.vmem [shape: f32[1,32], index: 3, kind: input, shape index: {}]   ;;  %s417_s4 = inlined_call_operand.vmem [shape: f32[2,12,32], index: 4, kind: output, shape index: {}]  }
   0x1   :  { %v22_v0 = vld [vmem:[%s413_s1] sm:$0xff]  ;;  %v23_v1 = vld [vmem:[%s413_s1 + $0x8] sm:$0xff]  ;;  %v300_v2 = vld [vmem:[%s413_s1 + $0x10] sm:$0xff] }
   0x2   :  { %26 = vrot.lane.b32.xlu0 %v22_v0, %s338_s19  ;;  %28 = vrot.lane.b32.xlu1 %v23_v1, %s338_s19  ;;  %v301_v3 = vld [vmem:[%s413_s1 + $0x18] sm:$0xff]  ;;  %v20_v4 = vld [vmem:[%s414_s0] sm:$0xff] }
   0x3   :  { %v21_v7 = vld [vmem:[%s414_s0 + $0x8] sm:$0xff]  ;;  %v298_v9 = vld [vmem:[%s414_s0 + $0x10] sm:$0xff]  ;;  %v17_v11 = vld [vmem:[%s415_s2] sm:$0xff] }
   0x4   :  { %v18_v12 = vld [vmem:[%s415_s2 + $0x8] sm:$0xff]  ;;  %v299_v15 = vld [vmem:[%s414_s0 + $0x18] sm:$0xff]  ;;  %v295_v23 = vld [vmem:[%s416_s3] ss:$0 sm:$0xff] }
   0x5   :  { %v328_v16 = vpack.c.bf16 %v18_v12, %v17_v11 }
   0x6   :  { %167 = vrot.lane.b32.xlu0 %v300_v2, %s338_s19  ;;  %169 = vrot.lane.b32.xlu1 %v301_v3, %s338_s19 }
   0x7   :  { %329 = vmatprep.subr.bf16.mxu0 %v328_v16  ;;  %333 = vmatprep.subr.bf16.mxu1 %v328_v16 }
   0x8   :  { %331 = vmatpush3.bf16.msra.mxu0 %v328_v16  ;;  %335 = vmatpush3.bf16.msra.mxu1 %v328_v16 }
  0x74   :  { %v27_v5 = vpop.permute.xlu0 %26  ;;  %v29_v6 = vpop.permute.xlu1 %28 }
  0x75   :  { %v33_v8 = vsel %vm32_vm0, %v20_v4, %v27_v5  ;;  %v34_v10 = vsel %vm32_vm0, %v21_v7, %v29_v6 }
  0x76   :  { %41 = vxpose.xlu0.b32.start [1/2] (short) (narrow) %v33_v8, 16 }
  0x78   :  { %v168_v13 = vpop.permute.xlu0 %167  ;;  %v170_v14 = vpop.permute.xlu1 %169 }
  0x79   :  { %v173_v17 = vsel %vm32_vm0, %v298_v9, %v168_v13  ;;  %v174_v18 = vsel %vm32_vm0, %v299_v15, %v170_v14 }
  0x7a   :  { %175 = vxpose.xlu1.b32.start [1/2] (short) (narrow) %v173_v17, 16  ;;  %42 = vxpose.xlu0.b32.end [2/2] (short) (narrow) %v34_v10, 16 }
  0x7e   :  { %176 = vxpose.xlu1.b32.end [2/2] (short) (narrow) %v174_v18, 16 }
  0xf6   :  { %v57_v19 = vpop.trf.xlu0 }
  0xf7   :  { %318 = vmatprep.mubr.msk.f32.mxu0 %vm73_vm1, %v57_v19 }
  0xfa   :  { %v191_v20 = vpop.trf.xlu1  ;;  %v58_v21 = vpop.trf.xlu0 }
  0xfb   :  { %325 = vmatprep.mubr.msk.f32.mxu1 %vm73_vm1, %v191_v20  ;;  %319 = vmatmul.mubr.msk.f32.vlgmr.msra.gmra.mrb[0].mxu0 %vm73_vm1, %v58_v21 }
  0xfe   :  { %v192_v22 = vpop.trf.xlu1 }
  0xff   :  { %326 = vmatmul.mubr.msk.f32.vlgmr.msra.gmra.mrb[0].mxu1 %vm73_vm1, %v192_v22 }
 0x1ce   :  { %v320_v24 = vpop.f32.mrb[0].mxu0 }
 0x1cf   :  { %v152_v25 = vadd.f32 %v320_v24, %v295_v23  ;;  %v146_v26 = vpop.f32.mrb[1].mxu0 }
 0x1d0   :  { %v147_v27 = vadd.f32 %v295_v23, %v146_v26 }
 0x1d1   :  { %158 = vst.msk [vmem:[%s417_s4 + $0x8] sm:$0xf] %vm157_vm2, %v152_v25 }
 0x1d2   :  { %156 = vst.msk [vmem:[%s417_s4] sm:$0xff] %vm155_vm3, %v147_v27  ;;  %v327_v28 = vpop.f32.mrb[0].mxu1 }
 0x1d3   :  { %v285_v29 = vadd.f32 %v327_v28, %v295_v23  ;;  %v279_v30 = vpop.f32.mrb[1].mxu1 }
 0x1d4   :  { %v280_v31 = vadd.f32 %v295_v23, %v279_v30 }
 0x1d5   :  { %305 = vst.msk [vmem:[%s417_s4 + $0x18] sm:$0xf] %vm157_vm2, %v285_v29 }
 0x1d6   :  { %304 = vst.msk [vmem:[%s417_s4 + $0x10] sm:$0xff] %vm155_vm3, %v280_v31 }

</bundles_post_ra>
